<compile_context>
chip_gen: v7x
topology: tpu7x:2x2x1
jax: 0.10.0
libtpu: 0.0.40
codegen_flags: <defaults>
</compile_context>

<pallas_src>
import functools

import jax
import jax.numpy as jnp
from jax.experimental import pallas as pl
from jax.experimental.pallas import tpu as pltpu


def _round_up(n, m):
    return ((n + m - 1) // m) * m


# ----------------------------------------------------------------------------
# Pallas kernel
# ----------------------------------------------------------------------------
def _shift_rows(h, s):
    """t with t[:, o, :] = h[:, o + s, :] (zero where o + s is out of range).

    `s` is a static Python int, so this lowers to static slices + concatenation.
    """
    Bt, L, C = h.shape
    if s == 0:
        return h
    if abs(s) >= L:
        return jnp.zeros_like(h)
    if s > 0:
        pad = jnp.zeros((Bt, s, C), h.dtype)
        return jnp.concatenate([h[:, s:, :], pad], axis=1)
    pad = jnp.zeros((Bt, -s, C), h.dtype)
    return jnp.concatenate([pad, h[:, : L + s, :]], axis=1)


def temporal_block_decoder_kernel(*refs, kernel_size, dilation, padding,
                                  has_downsample):
    if has_downsample:
        (x_ref, w1_ref, b1_ref, w2_ref, b2_ref, wd_ref, bd_ref, out_ref) = refs
    else:
        (x_ref, w1_ref, b1_ref, w2_ref, b2_ref, out_ref) = refs
        wd_ref = bd_ref = None

    Bt, L, Cin_p = x_ref.shape
    Cout_p = out_ref.shape[2]
    K = kernel_size
    x = x_ref[...]                                     # [Bt, L, Cin_p], MXU dtype

    def deconv_bn_relu(h, w_ref, b_ref):
        # stride-1 ConvTranspose1d (+ folded BN/bias) with the `padding` trim and
        # Chomp1d fused:  out[o] = ReLU(sum_j h[o + padding - j*dilation] @ W_j + b)
        Ci = h.shape[-1]
        taps = [_shift_rows(h, padding - j * dilation) for j in range(K)]
        hcat = taps[0] if K == 1 else jnp.concatenate(taps, axis=-1)  # [Bt,L,K*Ci]
        acc = jnp.dot(hcat.reshape(Bt * L, K * Ci), w_ref[...],
                      preferred_element_type=jnp.float32)   # one MXU matmul, f32 acc
        acc = acc.reshape(Bt, L, Cout_p) + b_ref[...].astype(jnp.float32)
        return jnp.maximum(acc, 0.0)                   # bias + ReLU epilogue, f32

    # layer 1: deconv1 -> chomp1 -> BN1(eval) -> ReLU (dropout = identity)
    h1 = deconv_bn_relu(x, w1_ref, b1_ref)
    # layer 2: deconv2 -> BN2(eval) -> chomp2 -> ReLU
    # (BN eval is a per-channel affine, so the BN/chomp order commutes with the
    #  fused chomp; h1 is cast once to the MXU operand dtype.)
    h2 = deconv_bn_relu(h1.astype(w2_ref.dtype), w2_ref, b2_ref)

    # residual: 1x1 ConvTranspose1d == matmul; skipped entirely when Cin == Cout
    if has_downsample:
        res = jnp.dot(x.reshape(Bt * L, Cin_p), wd_ref[...],
                      preferred_element_type=jnp.float32)
        res = res.reshape(Bt, L, Cout_p) + bd_ref[...].astype(jnp.float32)
    else:
        res = x.astype(jnp.float32)

    out_ref[...] = jnp.maximum(h2 + res, 0.0).astype(out_ref.dtype)


# ----------------------------------------------------------------------------
# Wrapper
# ----------------------------------------------------------------------------
def temporal_block_decoder(x_blc, p, *, kernel_size, stride, dilation, padding,
                           drop_end, batch_tile=None, out_dtype=None,
                           vmem_limit_bytes=None):
    assert stride == 1, "only stride=1 supported"  # TODO(synk): stride>1 path
    B, L, Cin = x_blc.shape
    K = kernel_size
    assert p["k"] == K and p["cin"] == Cin
    Cout, Cin_p, Cout_p = p["cout"], p["cin_p"], p["cout_p"]
    has_downsample = "wd" in p
    assert has_downsample == (Cin != Cout)

    # The residual add requires output length == input length, which pins
    # dilation*(K-1) == 2*padding + drop_end, so both deconv layers map L -> L.
    L1 = L + dilation * (K - 1) - 2 * padding - drop_end
    assert L1 == L, "residual add requires dilation*(K-1) == 2*padding + drop_end"

    if out_dtype is None:
        out_dtype = x_blc.dtype

    if batch_tile is None:
        # >= 2 grid steps so both TensorCores of a 2-TC chip (v7x) get work, but
        # as few/big steps as possible for the single-TC v5e/v6e (sequential grid).
        batch_tile = B // 2 if (B % 2 == 0 and B >= 2) else 1
    Bt = batch_tile
    assert B % Bt == 0

    # host-side channel padding (lane-dense layout; params are already padded)
    x_op = x_blc
    if Cin_p != Cin:
        x_op = jnp.pad(x_op, ((0, 0), (0, 0), (0, Cin_p - Cin)))
    x_op = x_op.astype(p["w1"].dtype)                  # bf16 (or f32) MXU operand

    args = [x_op, p["w1"], p["b1"], p["w2"], p["b2"]]
    if has_downsample:
        args += [p["wd"], p["bd"]]

    kernel = functools.partial(
        temporal_block_decoder_kernel, kernel_size=K, dilation=dilation,
        padding=padding, has_downsample=has_downsample)

    def const_spec(shape):  # whole-array block, constant across the grid
        return pl.BlockSpec(shape, lambda b: (0,) * len(shape))

    in_specs = [pl.BlockSpec((Bt, L, Cin_p), lambda b: (b, 0, 0))]
    in_specs += [const_spec(tuple(a.shape)) for a in args[1:]]
    out_specs = pl.BlockSpec((Bt, L, Cout_p), lambda b: (b, 0, 0))

    # cost hint + VMEM budget
    op_bytes = x_op.dtype.itemsize
    out_bytes = jnp.dtype(out_dtype).itemsize
    param_bytes = sum(int(a.size) * a.dtype.itemsize for a in args[1:])
    flops = 2 * B * L * K * (Cin_p + Cout_p) * Cout_p
    if has_downsample:
        flops += 2 * B * L * Cin_p * Cout_p
    bytes_accessed = (int(x_op.size) * op_bytes + B * L * Cout_p * out_bytes
                      + param_bytes)
    cost = pl.CostEstimate(flops=flops, transcendentals=0,
                           bytes_accessed=bytes_accessed)

    if vmem_limit_bytes is None:
        # double-buffered x/out blocks + params + im2col/f32 value temps;
        # clamped <= 48 MiB so the limit is valid on v7x (64 MiB/TC) too.
        block_bytes = Bt * L * (Cin_p * op_bytes + Cout_p * out_bytes)
        temp_bytes = Bt * L * (K * (Cin_p + Cout_p) * op_bytes + 12 * Cout_p)
        est = 2 * block_bytes + 2 * param_bytes + temp_bytes
        vmem_limit_bytes = int(min(max(2 * est, 32 << 20), 48 << 20))

    grid_spec = pltpu.PrefetchScalarGridSpec(
        num_scalar_prefetch=0,
        grid=(B // Bt,),
        in_specs=in_specs,
        out_specs=out_specs)

    out = pl.pallas_call(
        kernel,
        out_shape=jax.ShapeDtypeStruct((B, L, Cout_p), out_dtype),
        grid_spec=grid_spec,
        cost_estimate=cost,
        compiler_params=pltpu.CompilerParams(
            dimension_semantics=("parallel",),
            vmem_limit_bytes=vmem_limit_bytes),
    )(*args)

    return out[..., :Cout] if Cout_p != Cout else out


# ----------------------------------------------------------------------------
# Parameter construction (raw, module-style) + host-side folding for the kernel
# ----------------------------------------------------------------------------
def init_params(key, n_inputs, n_outputs, kernel_size, eps=1e-5):
    """Raw parameters mirroring the PyTorch module (weight_norm materialized)."""
    ks = jax.random.split(key, 14)

    def wn(v):
        # weight_norm: w = g * v / ||v||, norm over (out_ch, K); materialized with
        # g = ||v|| (its value at init), so w == v.
        # TODO(synk): for a trained checkpoint, fold the stored g parameter here.
        nrm = jnp.sqrt(jnp.sum(v * v, axis=(1, 2), keepdims=True))
        return nrm * v / nrm

    def bn_params(k0, k1, k2, k3):
        # non-trivial eval-mode stats to exercise the host-side BN folding
        return dict(
            gamma=1.0 + 0.1 * jax.random.normal(k0, (n_outputs,), jnp.float32),
            beta=0.1 * jax.random.normal(k1, (n_outputs,), jnp.float32),
            mean=0.1 * jax.random.normal(k2, (n_outputs,), jnp.float32),
            var=jnp.abs(1.0 + 0.1 * jax.random.normal(k3, (n_outputs,), jnp.float32)),
            eps=eps)

    # PyTorch ConvTranspose1d weight layout: (in_channels, out_channels, K)
    w1 = wn(jax.random.normal(ks[0], (n_inputs, n_outputs, kernel_size), jnp.float32) * 0.5)
    b1 = jax.random.normal(ks[1], (n_outputs,), jnp.float32) * 0.1
    w2 = wn(jax.random.normal(ks[2], (n_outputs, n_outputs, kernel_size), jnp.float32) * 0.5)
    b2 = jax.random.normal(ks[3], (n_outputs,), jnp.float32) * 0.1
    bn1 = bn_params(*ks[4:8])
    bn2 = bn_params(*ks[8:12])

    downsample = None
    if n_inputs != n_outputs:
        wd = jax.random.normal(ks[12], (n_inputs, n_outputs, 1), jnp.float32) * 0.01
        bd = jax.random.normal(ks[13], (n_outputs,), jnp.float32) * 0.1
        downsample = (wd, bd)

    return dict(w1=w1, b1=b1, bn1=bn1, w2=w2, b2=b2, bn2=bn2, downsample=downsample)


def prepare_params(raw, *, mxu_dtype=jnp.bfloat16, channel_align=128):
    """Fold BatchNorm(eval) + conv bias into weights/bias (in f32), pad channels
    to lane-aligned multiples, lay each deconv's weights out as a single im2col
    matrix [K*Cin_p, Cout_p], then cast the matmul operands to the MXU dtype
    (biases stay f32 for the f32 epilogue)."""
    K = raw["w1"].shape[2]
    Cin, Cout = raw["w1"].shape[0], raw["w1"].shape[1]
    Cin_p = _round_up(Cin, channel_align)
    Cout_p = _round_up(Cout, channel_align)

    def fold(w_pt, b, bn):
        scale = bn["gamma"] / jnp.sqrt(bn["var"] + bn["eps"])       # (Cout,)
        shift = bn["beta"] - bn["mean"] * scale
        w = jnp.transpose(w_pt, (2, 0, 1)) * scale[None, None, :]   # [K, Ci, Co] f32
        bf = (b * scale + shift)[None, :]                           # (1, Co)  f32
        return w, bf

    def pad_w(w, ci_p, co_p):
        return jnp.pad(w, ((0, 0), (0, ci_p - w.shape[1]), (0, co_p - w.shape[2])))

    def pad_b(b, co_p):
        return jnp.pad(b, ((0, 0), (0, co_p - b.shape[1])))

    w1, b1 = fold(raw["w1"], raw["b1"], raw["bn1"])
    w2, b2 = fold(raw["w2"], raw["b2"], raw["bn2"])
    out = dict(
        w1=pad_w(w1, Cin_p, Cout_p).reshape(K * Cin_p, Cout_p).astype(mxu_dtype),
        b1=pad_b(b1, Cout_p),
        w2=pad_w(w2, Cout_p, Cout_p).reshape(K * Cout_p, Cout_p).astype(mxu_dtype),
        b2=pad_b(b2, Cout_p),
        k=K, cin=Cin, cout=Cout, cin_p=Cin_p, cout_p=Cout_p)
    if raw["downsample"] is not None:
        wd_pt, bd = raw["downsample"]                                # (Ci,Co,1), (Co,)
        out["wd"] = jnp.pad(wd_pt[:, :, 0],
                            ((0, Cin_p - Cin), (0, Cout_p - Cout))).astype(mxu_dtype)
        out["bd"] = pad_b(bd[None, :], Cout_p)
    return out


# ----------------------------------------------------------------------------
# Pure-JAX reference (raw params, module-faithful op order) for verification
# ----------------------------------------------------------------------------
def reference_forward(x_blc, raw, *, kernel_size, dilation, padding, drop_end):
    K = kernel_size

    def deconv(h, w_pt, b):           # h: (B, L, Cin); w_pt: (Cin, Cout, K)
        B, Lin, _ = h.shape
        Co = w_pt.shape[1]
        Lf = Lin + dilation * (K - 1)
        acc = jnp.zeros((B, Lf, Co), jnp.float32)
        for j in range(K):
            acc = acc.at[:, j * dilation:j * dilation + Lin, :].add(
                jnp.einsum("blc,co->blo", h, w_pt[:, :, j]))
        acc = acc + b[None, None, :]
        return acc[:, padding:Lf - padding, :]          # ConvTranspose1d padding trim

    def bn(h, p):
        scale = p["gamma"] / jnp.sqrt(p["var"] + p["eps"])
        return (h - p["mean"]) * scale + p["beta"]

    def chomp(h):
        return h[:, :h.shape[1] - drop_end, :]

    a1 = deconv(x_blc, raw["w1"], raw["b1"])
    h1 = jnp.maximum(bn(chomp(a1), raw["bn1"]), 0.0)    # chomp1 -> batch1 -> relu1
    a2 = deconv(h1, raw["w2"], raw["b2"])
    h2 = jnp.maximum(chomp(bn(a2, raw["bn2"])), 0.0)    # batch2 -> chomp2 -> relu2
    if raw["downsample"] is not None:
        wd, bd = raw["downsample"]
        res = jnp.einsum("blc,co->blo", x_blc, wd[:, :, 0]) + bd[None, None, :]
    else:
        res = x_blc
    return jnp.maximum(h2 + res, 0.0)


# ----------------------------------------------------------------------------
if __name__ == "__main__":
    B, L = 4, 16
    kernel_size, stride, dilation, padding, drop_end = 3, 1, 1, 0, 2
    key = jax.random.PRNGKey(0)

    # Two configs: with downsample (Cin != Cout) and residual-identity (Cin == Cout).
    for cfg_i, (Cin, Cout) in enumerate([(4, 8), (8, 8)]):
        kx, kp, key = jax.random.split(key, 3)

        # PyTorch-style NCL input, transposed to [B, L, C] for the kernel.
        x_ncl = jax.random.normal(kx, (B, Cin, L), jnp.float32)
        x_blc = jnp.transpose(x_ncl, (0, 2, 1))

        raw = init_params(kp, Cin, Cout, kernel_size)
        ref = reference_forward(
            x_blc, raw, kernel_size=kernel_size, dilation=dilation,
            padding=padding, drop_end=drop_end)
        ref_scale = 1.0 + float(jnp.max(jnp.abs(ref)))

        # f32 MXU operands: tight semantic check; bf16 operands: perf path, loose.
        for mxu_dtype, tol in ((jnp.float32, 1e-4), (jnp.bfloat16, 5e-2 * ref_scale)):
            params = prepare_params(raw, mxu_dtype=mxu_dtype)
            out = temporal_block_decoder(
                x_blc, params, kernel_size=kernel_size, stride=stride,
                dilation=dilation, padding=padding, drop_end=drop_end,
                batch_tile=2)
            out = jax.block_until_ready(out)            # [B, L, Cout]

            assert out.shape == (B, L, Cout), out.shape
            err = float(jnp.max(jnp.abs(out.astype(jnp.float32) - ref)))
            assert err < tol, f"config {cfg_i} {mxu_dtype}: max abs diff {err} >= {tol}"

    print("KERNEL_OK")
</pallas_src>

<mosaic_0001>
module attributes {stable_mosaic.version = 11 : i64} {
  func.func @temporal_block_decoder_kernel(%arg0: i32, %arg1: memref<2x16x128xf32, #tpu.memory_space<vmem>>, %arg2: memref<384x128xf32, #tpu.memory_space<vmem>>, %arg3: memref<1x128xf32, #tpu.memory_space<vmem>>, %arg4: memref<384x128xf32, #tpu.memory_space<vmem>>, %arg5: memref<1x128xf32, #tpu.memory_space<vmem>>, %arg6: memref<128x128xf32, #tpu.memory_space<vmem>>, %arg7: memref<1x128xf32, #tpu.memory_space<vmem>>, %arg8: memref<2x16x128xf32, #tpu.memory_space<vmem>>) attributes {dimension_semantics = [#tpu.dimension_semantics<parallel>], iteration_bounds = array<i64: 2>, scalar_prefetch = 0 : i64, scratch_operands = 0 : i64, tpu.core_type = #tpu.core_type<tc>, window_params = [{transform_indices = @transform_0, window_bounds = array<i64: 2, 16, 128>}, {pipeline_mode = #tpu.pipeline_mode<synchronous>, transform_indices = @transform_1, window_bounds = array<i64: 384, 128>}, {pipeline_mode = #tpu.pipeline_mode<synchronous>, transform_indices = @transform_2, window_bounds = array<i64: 1, 128>}, {pipeline_mode = #tpu.pipeline_mode<synchronous>, transform_indices = @transform_3, window_bounds = array<i64: 384, 128>}, {pipeline_mode = #tpu.pipeline_mode<synchronous>, transform_indices = @transform_4, window_bounds = array<i64: 1, 128>}, {pipeline_mode = #tpu.pipeline_mode<synchronous>, transform_indices = @transform_5, window_bounds = array<i64: 128, 128>}, {pipeline_mode = #tpu.pipeline_mode<synchronous>, transform_indices = @transform_6, window_bounds = array<i64: 1, 128>}, {transform_indices = @transform_7, window_bounds = array<i64: 2, 16, 128>}]} {
    %c0 = arith.constant 0 : index
    %c0_0 = arith.constant 0 : index
    %c0_1 = arith.constant 0 : index
    %0 = vector.load %arg1[%c0, %c0_0, %c0_1] : memref<2x16x128xf32, #tpu.memory_space<vmem>>, vector<2x16x128xf32>
    %cst = arith.constant 0.000000e+00 : f32
    %1 = vector.broadcast %cst : f32 to vector<2x1x128xf32>
    %2 = vector.extract_strided_slice %0 {offsets = [0, 0, 0], sizes = [2, 15, 128], strides = [1, 1, 1]} : vector<2x16x128xf32> to vector<2x15x128xf32>
    %3 = tpu.concatenate %1, %2 in 1 : vector<2x1x128xf32>, vector<2x15x128xf32> -> vector<2x16x128xf32>
    %cst_2 = arith.constant 0.000000e+00 : f32
    %4 = vector.broadcast %cst_2 : f32 to vector<2x2x128xf32>
    %5 = vector.extract_strided_slice %0 {offsets = [0, 0, 0], sizes = [2, 14, 128], strides = [1, 1, 1]} : vector<2x16x128xf32> to vector<2x14x128xf32>
    %6 = tpu.concatenate %4, %5 in 1 : vector<2x2x128xf32>, vector<2x14x128xf32> -> vector<2x16x128xf32>
    %7 = tpu.concatenate %0, %3, %6 in 2 : vector<2x16x128xf32>, vector<2x16x128xf32>, vector<2x16x128xf32> -> vector<2x16x384xf32>
    %8 = vector.shape_cast %7 : vector<2x16x384xf32> to vector<32x384xf32>
    %c0_3 = arith.constant 0 : index
    %c0_4 = arith.constant 0 : index
    %9 = vector.load %arg2[%c0_3, %c0_4] : memref<384x128xf32, #tpu.memory_space<vmem>>, vector<384x128xf32>
    %cst_5 = arith.constant dense<0.000000e+00> : vector<32x128xf32>
    %10 = tpu.matmul %8, %9, %cst_5 {dimension_numbers = #tpu.dot_dimension_numbers<[1], [0], [0], [1], [0, 0, 1, 1], [], []>} : vector<32x384xf32>, vector<384x128xf32>, vector<32x128xf32> -> vector<32x128xf32>
    %11 = vector.shape_cast %10 : vector<32x128xf32> to vector<2x16x128xf32>
    %c0_6 = arith.constant 0 : index
    %c0_7 = arith.constant 0 : index
    %12 = vector.load %arg3[%c0_6, %c0_7] : memref<1x128xf32, #tpu.memory_space<vmem>>, vector<1x128xf32>
    %13 = vector.shape_cast %12 : vector<1x128xf32> to vector<1x1x128xf32>
    %14 = vector.broadcast %13 : vector<1x1x128xf32> to vector<2x16x128xf32>
    %15 = arith.addf %11, %14 : vector<2x16x128xf32>
    %cst_8 = arith.constant 0.000000e+00 : f32
    %16 = vector.broadcast %cst_8 : f32 to vector<2x16x128xf32>
    %17 = arith.maximumf %15, %16 : vector<2x16x128xf32>
    %cst_9 = arith.constant 0.000000e+00 : f32
    %18 = vector.broadcast %cst_9 : f32 to vector<2x1x128xf32>
    %19 = vector.extract_strided_slice %17 {offsets = [0, 0, 0], sizes = [2, 15, 128], strides = [1, 1, 1]} : vector<2x16x128xf32> to vector<2x15x128xf32>
    %20 = tpu.concatenate %18, %19 in 1 : vector<2x1x128xf32>, vector<2x15x128xf32> -> vector<2x16x128xf32>
    %cst_10 = arith.constant 0.000000e+00 : f32
    %21 = vector.broadcast %cst_10 : f32 to vector<2x2x128xf32>
    %22 = vector.extract_strided_slice %17 {offsets = [0, 0, 0], sizes = [2, 14, 128], strides = [1, 1, 1]} : vector<2x16x128xf32> to vector<2x14x128xf32>
    %23 = tpu.concatenate %21, %22 in 1 : vector<2x2x128xf32>, vector<2x14x128xf32> -> vector<2x16x128xf32>
    %24 = tpu.concatenate %17, %20, %23 in 2 : vector<2x16x128xf32>, vector<2x16x128xf32>, vector<2x16x128xf32> -> vector<2x16x384xf32>
    %25 = vector.shape_cast %24 : vector<2x16x384xf32> to vector<32x384xf32>
    %c0_11 = arith.constant 0 : index
    %c0_12 = arith.constant 0 : index
    %26 = vector.load %arg4[%c0_11, %c0_12] : memref<384x128xf32, #tpu.memory_space<vmem>>, vector<384x128xf32>
    %cst_13 = arith.constant dense<0.000000e+00> : vector<32x128xf32>
    %27 = tpu.matmul %25, %26, %cst_13 {dimension_numbers = #tpu.dot_dimension_numbers<[1], [0], [0], [1], [0, 0, 1, 1], [], []>} : vector<32x384xf32>, vector<384x128xf32>, vector<32x128xf32> -> vector<32x128xf32>
    %28 = vector.shape_cast %27 : vector<32x128xf32> to vector<2x16x128xf32>
    %c0_14 = arith.constant 0 : index
    %c0_15 = arith.constant 0 : index
    %29 = vector.load %arg5[%c0_14, %c0_15] : memref<1x128xf32, #tpu.memory_space<vmem>>, vector<1x128xf32>
    %30 = vector.shape_cast %29 : vector<1x128xf32> to vector<1x1x128xf32>
    %31 = vector.broadcast %30 : vector<1x1x128xf32> to vector<2x16x128xf32>
    %32 = arith.addf %28, %31 : vector<2x16x128xf32>
    %cst_16 = arith.constant 0.000000e+00 : f32
    %33 = vector.broadcast %cst_16 : f32 to vector<2x16x128xf32>
    %34 = arith.maximumf %32, %33 : vector<2x16x128xf32>
    %35 = vector.shape_cast %0 : vector<2x16x128xf32> to vector<32x128xf32>
    %c0_17 = arith.constant 0 : index
    %c0_18 = arith.constant 0 : index
    %36 = vector.load %arg6[%c0_17, %c0_18] : memref<128x128xf32, #tpu.memory_space<vmem>>, vector<128x128xf32>
    %cst_19 = arith.constant dense<0.000000e+00> : vector<32x128xf32>
    %37 = tpu.matmul %35, %36, %cst_19 {dimension_numbers = #tpu.dot_dimension_numbers<[1], [0], [0], [1], [0, 0, 1, 1], [], []>} : vector<32x128xf32>, vector<128x128xf32>, vector<32x128xf32> -> vector<32x128xf32>
    %38 = vector.shape_cast %37 : vector<32x128xf32> to vector<2x16x128xf32>
    %c0_20 = arith.constant 0 : index
    %c0_21 = arith.constant 0 : index
    %39 = vector.load %arg7[%c0_20, %c0_21] : memref<1x128xf32, #tpu.memory_space<vmem>>, vector<1x128xf32>
    %40 = vector.shape_cast %39 : vector<1x128xf32> to vector<1x1x128xf32>
    %41 = vector.broadcast %40 : vector<1x1x128xf32> to vector<2x16x128xf32>
    %42 = arith.addf %38, %41 : vector<2x16x128xf32>
    %43 = arith.addf %34, %42 : vector<2x16x128xf32>
    %cst_22 = arith.constant 0.000000e+00 : f32
    %44 = vector.broadcast %cst_22 : f32 to vector<2x16x128xf32>
    %45 = arith.maximumf %43, %44 : vector<2x16x128xf32>
    %c0_23 = arith.constant 0 : index
    %c0_24 = arith.constant 0 : index
    %c0_25 = arith.constant 0 : index
    %46 = vector.load %arg8[%c0_23, %c0_24, %c0_25] : memref<2x16x128xf32, #tpu.memory_space<vmem>>, vector<2x16x128xf32>
    tpu.vector_store %arg8[%c0_23, %c0_24, %c0_25], %45 {strides = array<i32>} : memref<2x16x128xf32, #tpu.memory_space<vmem>>, vector<2x16x128xf32>,
    return
  }
  func.func @transform_0(%arg0: i32) -> (i32, i32, i32) {
    %c0_i32 = arith.constant 0 : i32
    %c0_i32_0 = arith.constant 0 : i32
    %c0_i32_1 = arith.constant 0 : i32
    return %arg0, %c0_i32, %c0_i32_0 : i32, i32, i32
  }
  func.func @transform_1(%arg0: i32) -> (i32, i32) {
    %c0_i32 = arith.constant 0 : i32
    %c0_i32_0 = arith.constant 0 : i32
    %c0_i32_1 = arith.constant 0 : i32
    return %c0_i32, %c0_i32_0 : i32, i32
  }
  func.func @transform_2(%arg0: i32) -> (i32, i32) {
    %c0_i32 = arith.constant 0 : i32
    %c0_i32_0 = arith.constant 0 : i32
    %c0_i32_1 = arith.constant 0 : i32
    return %c0_i32, %c0_i32_0 : i32, i32
  }
  func.func @transform_3(%arg0: i32) -> (i32, i32) {
    %c0_i32 = arith.constant 0 : i32
    %c0_i32_0 = arith.constant 0 : i32
    %c0_i32_1 = arith.constant 0 : i32
    return %c0_i32, %c0_i32_0 : i32, i32
  }
  func.func @transform_4(%arg0: i32) -> (i32, i32) {
    %c0_i32 = arith.constant 0 : i32
    %c0_i32_0 = arith.constant 0 : i32
    %c0_i32_1 = arith.constant 0 : i32
    return %c0_i32, %c0_i32_0 : i32, i32
  }
  func.func @transform_5(%arg0: i32) -> (i32, i32) {
    %c0_i32 = arith.constant 0 : i32
    %c0_i32_0 = arith.constant 0 : i32
    %c0_i32_1 = arith.constant 0 : i32
    return %c0_i32, %c0_i32_0 : i32, i32
  }
  func.func @transform_6(%arg0: i32) -> (i32, i32) {
    %c0_i32 = arith.constant 0 : i32
    %c0_i32_0 = arith.constant 0 : i32
    %c0_i32_1 = arith.constant 0 : i32
    return %c0_i32, %c0_i32_0 : i32, i32
  }
  func.func @transform_7(%arg0: i32) -> (i32, i32, i32) {
    %c0_i32 = arith.constant 0 : i32
    %c0_i32_0 = arith.constant 0 : i32
    %c0_i32_1 = arith.constant 0 : i32
    return %arg0, %c0_i32, %c0_i32_0 : i32, i32, i32
  }
}

</mosaic_0001>

<bundles_post_ra>
// kernel: tpu_custom_call.1
= control target key start
LH: loop header
LB: loop body
LE: loop exit
PB: predicated region body
PF: predicated region fallthrough
CT: control target
= control target key end

     0   :  { %12 = vsyncpa [#allocation3], 0  ;;  %s2264_s0 = inlined_call_operand.hbm [shape: f32[4,16,128], index: 0, kind: input, shape index: {}]   ;;  %s2265_s1 = inlined_call_operand.hbm [shape: f32[384,128], index: 1, kind: input, shape index: {}]   ;;  %s2266_s2 = inlined_call_operand.vmem [shape: f32[1,128], index: 2, kind: input, shape index: {}]   ;;  %s2267_s3 = inlined_call_operand.hbm [shape: f32[384,128], index: 3, kind: input, shape index: {}]   ;;  %s2268_s4 = inlined_call_operand.vmem [shape: f32[1,128], index: 4, kind: input, shape index: {}]   ;;  %s2269_s5 = inlined_call_operand.hbm [shape: f32[128,128], index: 5, kind: input, shape index: {}]   ;;  %s2270_s6 = inlined_call_operand.vmem [shape: f32[1,128], index: 6, kind: input, shape index: {}]   ;;  %s2271_s7 = inlined_call_operand.hbm [shape: f32[4,16,128], index: 7, kind: output, shape index: {}]  }
   0x1   :  { %14 = vsyncpa [#allocation3 + $0x1], 0 }
   0x2   :  { %15 = vsyncpa [#allocation6], 0 }
   0x3   :  { %16 = vsyncpa [#allocation9], 0 }
   0x4   :  { %17 = vsyncpa [#allocation4], 0 }
   0x5   :  { %19 = vsyncpa [#allocation4 + $0x1], 0  ;;  %s1916_s24 = smov 0   ;;  %s1918_s25 = smov 0  }
   0x6   :  { %s1920_s26 = smov 0   ;;  %s1922_s27 = smov 0  }
   0x7 LB: > { %s1937_s28 = sadd.s32 4294967295, %s1865_s27   ;;  %s1113_s29 = sadd.s32 4294967294, %s1865_s27   ;;  %s1865_s27 = sphi %s1922_s27, %s2301_s27   ;;  %s1861_s26 = sphi %s1920_s26, %s2300_s26   ;;  %s1857_s25 = sphi %s1918_s25, %s2299_s25   ;;  %s1853_s24 = sphi %s1916_s24, %s2298_s24  }
   0x8   : > { %p45_p0 = scmp.ne.s32.totalorder %s1857_s25, %s1853_s24  ;;  %p2272_p1 = scmp.eq.s32.totalorder %s1937_s28, 0 }
   0x9   : > { %p201_p3 = scmp.eq.s32.totalorder %s1113_s29, 1  ;;  %p1114_p5 = scmp.ge.s32.totalorder %s1865_s27, 1 }
   0xa   : > { %p1946_p4 = por %p2272_p1, %p45_p0  ;;  %p208_p7 = scmp.lt.s32.totalorder %s1865_s27, 3 }
   0xb   : > { %p1951_p6 = por %p201_p3, %p45_p0  ;;  %s1867_s10 = smov [#allocation5]  }
   0xc   : > { %s2276_s30 = scalar_select %p1946_p4, 1, 0 }
   0xd   : > { %s2277_s8 = scalar_select %p1951_p6, 1, 0 }
   0xe   : > { %p1956_p8 = pnand %p1114_p5, %p208_p7  ;;  %s220_s11 = sshll.u32 %s1867_s10, 4  ;;  %s1960_s11 = int_to_ptr.vmem [resolvable:$true] %s220_s11 }
   0xf   : > { %2278 = sst [smem:[#allocation15_spill]] %s2277_s8  ;;  %s1868_s13 = smov [#allocation7]  }
  0x10   : > { %s2279_s9 = scalar_select %p1956_p8, 1, 0 }
  0x11   : > { %p1612_p9 = pneg %p1956_p8  ;;  %s236_s14 = sshll.u32 %s1868_s13, 4  ;;  %s1971_s14 = int_to_ptr.vmem [resolvable:$true] %s236_s14 }
  0x12   : > { %s1869_s15 = smov [#allocation8]   ;;  %s1677_s19 = scalar_lea.hbm %s2265_s1, 6144 }
  0x13   : > { %p1967_p11 = pnand %p1612_p9, %p2272_p1  ;;  %s1973_s16 = sshll.u32 %s1869_s15, 4  ;;  %s253_s16 = int_to_ptr.vmem [resolvable:$true] %s1973_s16 }
  0x14   : > { %p1678_p12 = scmp.ne.s32.totalorder %s2265_s1, %s1677_s19  ;;  %p1684_p5 = scmp.lt.u32.totalorder %s1677_s19, %s2265_s1 }
  0x15   : > { %p1983_p13 = pneg %p1967_p11 }
  0x17   : > { %p1680_p0 = pnand %p1983_p13, %p1678_p12 }
  0x19   : > { %p1681_p3 = pneg %p1680_p0 }
  0x1b   : > { %p1686_p7 = pnand %p1684_p5, %p1681_p3 }
  0x1d   : > { %1689 = shalt.err (!%p1686_p7)
}
  0x1e   : > { %s1690_s10 = scalar_lea.vmem %s1960_s11, 6144  ;;  %p1698_p2 = scmp.lt.s32.totalorder %s1960_s11, %s1960_s11 }
  0x1f   : > { %p1691_p9 = scmp.ne.s32.totalorder %s1960_s11, %s1690_s10  ;;  %p1699_p6 = scmp.lt.s32.totalorder %s1690_s10, %s1690_s10 }
  0x21   : > { %p1693_p10 = pnand %p1691_p9, %p1983_p13  ;;  %p1700_p12 = por %p1699_p6, %p1698_p2 }
  0x23   : > { %p1694_p1 = pneg %p1693_p10 }
  0x25   : > { %p1701_p0 = pnand %p1700_p12, %p1694_p1 }
  0x27   : > { %1704 = shalt.err (!%p1701_p0)
}
  0x28   : > { %s1870_s13 = smov 128   ;;  %s1871_s15 = smov 8  }
  0x29   : > { %1615 = dma.hbm_to_vmem [thread:$0]  (!%p1967_p11), %s2265_s1, 6144, %s1960_s11, [#allocation6], %s1870_s13, %s1870_s13, %s1871_s15  }
  0x2a   : > { %s1705_s21 = scalar_lea.hbm %s2267_s3, 6144 }
  0x2b   : > { %p1706_p1 = scmp.ne.s32.totalorder %s2267_s3, %s1705_s21  ;;  %p1712_p10 = scmp.lt.u32.totalorder %s1705_s21, %s2267_s3 }
  0x2d   : > { %p1708_p2 = pnand %p1706_p1, %p1983_p13 }
  0x2f   : > { %p1709_p6 = pneg %p1708_p2 }
  0x31   : > { %p1714_p3 = pnand %p1712_p10, %p1709_p6 }
  0x33   : > { %1717 = shalt.err (!%p1714_p3)
}
  0x34   : > { %s1718_s11 = scalar_lea.vmem %s1971_s14, 6144  ;;  %p1726_p12 = scmp.lt.s32.totalorder %s1971_s14, %s1971_s14 }
  0x35   : > { %p1719_p5 = scmp.ne.s32.totalorder %s1971_s14, %s1718_s11  ;;  %p1727_p0 = scmp.lt.s32.totalorder %s1718_s11, %s1718_s11 }
  0x37   : > { %p1721_p7 = pnand %p1719_p5, %p1983_p13  ;;  %p1728_p1 = por %p1727_p0, %p1726_p12 }
  0x39   : > { %p1722_p9 = pneg %p1721_p7 }
  0x3b   : > { %p1729_p2 = pnand %p1728_p1, %p1722_p9 }
  0x3d   : > { %1732 = shalt.err (!%p1729_p2)
}
  0x3e   : > { %1618 = dma.hbm_to_vmem [thread:$0]  (!%p1967_p11), %s2267_s3, 6144, %s1971_s14, [#allocation6], %s1870_s13, %s1870_s13, %s1871_s15  }
  0x3f   : > { %s1733_s20 = scalar_lea.hbm %s2269_s5, 2048 }
  0x40   : > { %p1734_p6 = scmp.ne.s32.totalorder %s2269_s5, %s1733_s20  ;;  %p1740_p5 = scmp.lt.u32.totalorder %s1733_s20, %s2269_s5 }
  0x42   : > { %p1736_p10 = pnand %p1734_p6, %p1983_p13 }
  0x44   : > { %p1737_p3 = pneg %p1736_p10 }
  0x46   : > { %p1742_p7 = pnand %p1740_p5, %p1737_p3 }
  0x48   : > { %1745 = shalt.err (!%p1742_p7)
}
  0x49   : > { %s1746_s11 = scalar_lea.vmem %s253_s16, 2048  ;;  %p1754_p1 = scmp.lt.s32.totalorder %s253_s16, %s253_s16 }
  0x4a   : > { %p1747_p9 = scmp.ne.s32.totalorder %s253_s16, %s1746_s11  ;;  %p1755_p2 = scmp.lt.s32.totalorder %s1746_s11, %s1746_s11 }
  0x4c   : > { %p1749_p12 = pnand %p1747_p9, %p1983_p13  ;;  %p1756_p4 = por %p1755_p2, %p1754_p1 }
  0x4e   : > { %p1750_p0 = pneg %p1749_p12 }
  0x50   : > { %p1757_p8 = pnand %p1756_p4, %p1750_p0 }
  0x52   : > { %1760 = shalt.err (!%p1757_p8)
}
  0x53   : > { %1621 = dma.hbm_to_vmem [thread:$0]  (!%p1967_p11), %s2269_s5, 2048, %s253_s16, [#allocation9], %s1870_s13, %s1870_s13, %s1871_s15  }
  0x54   : > { %s2056_s22 = sadd.s32 1, %s1865_s27   ;;  %s32_s17 = sadd.s32 1, %s1861_s26 }
  0x55   : > { %s29_s12 = ssub.s32 %s1865_s27, %s2056_s22  ;;  %p39_p8 = scmp.ne.s32.totalorder %s1861_s26, %s1857_s25 }
  0x56   : > { %p30_p4 = scmp.eq.s32.totalorder %s29_s12, 0  ;;  %p40_p13 = scmp.eq.s32.totalorder %s1865_s27, 0 }
  0x57   : > { %p1633_p6 = scmp.lt.s32.totalorder %s1865_s27, 2  ;;  %p2282_p3 = scmp.eq.s32.totalorder %s1937_s28, 1 }
  0x58   : > { %s2066_s18 = scalar_select %p30_p4, %s1861_s26, %s32_s17  }
  0x59   : > { %p41_p10 = por %p40_p13, %p39_p8  ;;  %p2070_p5 = por %p2282_p3, %p39_p8 }
  0x5a   : > { %s269_s20 = sand.u32 1, %s1861_s26   ;;  %s1155_s21 = sshll.u32 %s1865_s27, 9 }
  0x5b   : > { %s1119_s16 = sshll.u32 %s269_s20, 5  ;;  %s2079_s10 = scalar_lea.hbm %s2264_s0, %s1155_s21 }
  0x5c   : > { %s273_s11 = scalar_lea.vmem [#allocation2], %s1119_s16  ;;  %p2081_p11 = pnand %p1633_p6, %p41_p10 }
  0x5d   : > { %s281_s14 = sshll.u32 %s273_s11, 4  ;;  %s2087_s12 = scalar_lea.sflag [#allocation3], %s269_s20  ;;  %s2085_s14 = int_to_ptr.vmem [resolvable:$true] %s281_s14 }
  0x5e   : > { %s1761_s17 = scalar_lea.hbm %s2079_s10, 512  ;;  %p1763_p9 = pneg %p2081_p11 }
  0x5f   : > { %p1762_p7 = scmp.ne.s32.totalorder %s2079_s10, %s1761_s17  ;;  %s1766_s23 = scalar_lea.hbm %s2264_s0, 1024 }
  0x60   : > { %p1767_p1 = scmp.lt.u32.totalorder %s2079_s10, %s2264_s0  ;;  %p1768_p2 = scmp.lt.u32.totalorder %s1766_s23, %s1761_s17 }
  0x61   : > { %p1764_p12 = pnand %p1763_p9, %p1762_p7  ;;  %p1770_p8 = scmp.lt.u32.totalorder %s1761_s17, %s2079_s10 }
  0x62   : > { %p1769_p4 = por %p1768_p2, %p1767_p1 }
  0x63   : > { %p1765_p0 = pneg %p1764_p12 }
  0x64   : > { %p1771_p13 = por %p1770_p8, %p1769_p4 }
  0x66   : > { %p1772_p6 = pnand %p1771_p13, %p1765_p0 }
  0x68   : > { %1775 = shalt.err (!%p1772_p6)
}
  0x69   : > { %s1776_s20 = scalar_lea.vmem %s2085_s14, 512  ;;  %s1872_s21 = smov [#allocation2]  }
  0x6a   : > { %p1777_p10 = scmp.ne.s32.totalorder %s2085_s14, %s1776_s20  ;;  %s1781_s16 = sshll.u32 %s1872_s21, 4  ;;  %s1782_s16 = int_to_ptr.vmem [resolvable:$false] %s1781_s16 }
  0x6b   : > { %s1783_s29 = scalar_lea.vmem %s1782_s16, 1024  ;;  %p1784_p12 = scmp.lt.s32.totalorder %s2085_s14, %s1782_s16 }
  0x6c   : > { %p1779_p3 = pnand %p1777_p10, %p1763_p9  ;;  %p1785_p1 = scmp.lt.s32.totalorder %s1783_s29, %s1776_s20 }
  0x6e   : > { %p1780_p7 = pneg %p1779_p3  ;;  %p1786_p2 = por %p1785_p1, %p1784_p12 }
  0x70   : > { %p1787_p4 = pnand %p1786_p2, %p1780_p7 }
  0x72   : > { %1790 = shalt.err (!%p1787_p4)
}
  0x73   : > { %1625 = dma.hbm_to_vmem [thread:$0]  (!%p2081_p11), %s2079_s10, 512, %s2085_s14, %s2087_s12, %s1870_s13, %s1870_s13, %s1871_s15  }
  0x74   : > { %p2285_p9 = scmp.ne.s32.totalorder %s2279_s9, 0 }
  0x75   : > { %s2121_s17 = sand.u32 (!%p2285_p9), 1, %s1857_s25   ;;  %p2286_p0 = scmp.ne.s32.totalorder (!%p2285_p9), %s2276_s30, 0 }
  0x76   : > { %293 = sbr.rel (%p2285_p9) target bundleno = 662 (0x296), region = 48  ;;  %s1124_s23 = sshll.u32 (!%p2285_p9), %s2121_s17, 5 }
  0x77   : > { %s296_s11 = scalar_lea.sflag (!%p2285_p9), [#allocation3], %s2121_s17  ;;  %s2127_s8 = scalar_lea.vmem (!%p2285_p9), [#allocation2], %s1124_s23 }
  0x7d   : > { %1836 = dma.done.wait (%p2286_p0), %s296_s11, 512  }
  0x7e   : > { %1838 = vsyncadd (%p2286_p0), %s296_s11, 4294966784  ;;  %p2287_p11 = scmp.eq.s32.totalorder %s1937_s28, 0 }
  0x80   : > { %1840 = dma.done.wait (%p2287_p11), [#allocation6], 12288   ;;  %p2288_p8 = pmov %p2287_p11 }
  0x82   : > { %1842 = vsyncadd (%p2288_p8), [#allocation6], 4294955008  ;;  %p2289_p13 = pmov %p2288_p8 }
  0x83   : > { %p2290_p6 = pmov %p2288_p8 }
  0x84   : > { %1844 = dma.done.wait (%p2289_p13), [#allocation9], 2048  }
  0x85   : > { %1846 = vsyncadd (%p2290_p6), [#allocation9], 4294965248  ;;  %v394_v0 = vld [vmem:[#allocation5 + $0x80] sm:$0xff]  ;;  %v395_v1 = vld [vmem:[#allocation5 + $0x88] sm:$0xff]  ;;  %vm352_vm0 = vcmask 1040384   ;;  %vm365_vm1 = vcmask 1041408  }
  0x86   : > { %v378_v2 = vld [vmem:[#allocation5] sm:$0xff]  ;;  %v1420_v3 = vpack.c.bf16 %v395_v1, %v394_v0  ;;  %v379_v4 = vld [vmem:[#allocation5 + $0x8] sm:$0xff]  ;;  %v396_v9 = vld [vmem:[#allocation5 + $0x90] sm:$0xff]  ;;  %s341_s12 = scalar_lea.vmem [#allocation10], %s1124_s23  ;;  %s1157_s21 = sshll.u32 %s1937_s28, 9 }
  0x87   : > { %v410_v5 = vld [vmem:[#allocation5 + $0x100] sm:$0xff]  ;;  %v411_v6 = vld [vmem:[#allocation5 + $0x108] sm:$0xff]  ;;  %v1422_v7 = vpack.c.bf16 %v379_v4, %v378_v2  ;;  %v397_v10 = vld [vmem:[#allocation5 + $0x98] sm:$0xff]  ;;  %s1011_s20 = sshll.u32 %s341_s12, 4  ;;  %s2220_s23 = scalar_lea.hbm %s2271_s7, %s1157_s21  ;;  %s2215_s20 = int_to_ptr.vmem [resolvable:$true] %s1011_s20 }
  0x88   : > { %v1452_v8 = vpack.c.bf16 %v411_v6, %v410_v5  ;;  %v380_v11 = vld [vmem:[#allocation5 + $0x10] sm:$0xff]  ;;  %1421 = vmatprep.subr.bf16.mxu0 %v1420_v3  ;;  %v1424_v12 = vpack.c.bf16 %v397_v10, %v396_v9  ;;  %v381_v13 = vld [vmem:[#allocation5 + $0x18] sm:$0xff]  ;;  %v398_v18 = vld [vmem:[#allocation5 + $0xa0] sm:$0xff]  ;;  %s997_s11 = scalar_lea.sflag [#allocation4], %s2121_s17  ;;  %s1791_s28 = scalar_lea.vmem %s2215_s20, 512 }
  0x89   : > { %v412_v14 = vld [vmem:[#allocation5 + $0x110] sm:$0xff]  ;;  %v413_v15 = vld [vmem:[#allocation5 + $0x118] sm:$0xff]  ;;  %1423 = vmatpush3.bf16.msra.mxu0 %v1422_v7  ;;  %v1426_v16 = vpack.c.bf16 %v381_v13, %v380_v11  ;;  %v399_v19 = vld [vmem:[#allocation5 + $0xa8] sm:$0xff]  ;;  %p1792_p10 = scmp.ne.s32.totalorder %s2215_s20, %s1791_s28 }
  0x8a   : > { %1453 = vmatprep.subr.bf16.mxu1 %v1452_v8  ;;  %v1456_v17 = vpack.c.bf16 %v413_v15, %v412_v14  ;;  %v382_v20 = vld [vmem:[#allocation5 + $0x20] sm:$0xff]  ;;  %1425 = vmatprep.subr.bf16.mxu0 %v1424_v12  ;;  %v1428_v21 = vpack.c.bf16 %v399_v19, %v398_v18  ;;  %v383_v22 = vld [vmem:[#allocation5 + $0x28] sm:$0xff]  ;;  %v400_v26 = vld [vmem:[#allocation5 + $0xb0] sm:$0xff] }
  0x8b   : > { %1455 = vmatpush3.bf16.msra.mxu1 %v1452_v8  ;;  %v414_v23 = vld [vmem:[#allocation5 + $0x120] sm:$0xff]  ;;  %v415_v24 = vld [vmem:[#allocation5 + $0x128] sm:$0xff]  ;;  %v401_v27 = vld [vmem:[#allocation5 + $0xb8] sm:$0xff]  ;;  %v1430_v30 = vpack.c.bf16 %v383_v22, %v382_v20  ;;  %p1793_p3 = pnand %p1792_p10, %p2070_p5 }
  0x8c   : > { %1457 = vmatprep.subr.bf16.mxu1 %v1456_v17  ;;  %v1460_v25 = vpack.c.bf16 %v415_v24, %v414_v23  ;;  %v416_v28 = vld [vmem:[#allocation5 + $0x130] sm:$0xff]  ;;  %v417_v29 = vld [vmem:[#allocation5 + $0x138] sm:$0xff]  ;;  %v1432_v31 = vpack.c.bf16 %v401_v27, %v400_v26  ;;  %v402_v35 = vld [vmem:[#allocation5 + $0xc0] sm:$0xff] }
  0x8d   : > { %1427 = vmatpush3.bf16.msra.mxu0 %v1426_v16  ;;  %v384_v32 = vld [vmem:[#allocation5 + $0x30] sm:$0xff]  ;;  %v385_v33 = vld [vmem:[#allocation5 + $0x38] sm:$0xff]  ;;  %v1464_v34 = vpack.c.bf16 %v417_v29, %v416_v28  ;;  %v403_v36 = vld [vmem:[#allocation5 + $0xc8] sm:$0xff]  ;;  %p1794_p7 = pneg %p1793_p3 }
  0x8e   : > { %1429 = vmatprep.subr.bf16.mxu0 %v1428_v21  ;;  %v418_v37 = vld [vmem:[#allocation5 + $0x140] sm:$0xff]  ;;  %v419_v38 = vld [vmem:[#allocation5 + $0x148] sm:$0xff]  ;;  %v1434_v39 = vpack.c.bf16 %v385_v33, %v384_v32  ;;  %v1436_v40 = vpack.c.bf16 %v403_v36, %v402_v35  ;;  %v404_v44 = vld [vmem:[#allocation5 + $0xd0] sm:$0xff] }
  0x8f   : > { %1459 = vmatpush3.bf16.msra.mxu1 %v1456_v17  ;;  %v386_v41 = vld [vmem:[#allocation5 + $0x40] sm:$0xff]  ;;  %v387_v42 = vld [vmem:[#allocation5 + $0x48] sm:$0xff]  ;;  %v1468_v43 = vpack.c.bf16 %v419_v38, %v418_v37  ;;  %v405_v45 = vld [vmem:[#allocation5 + $0xd8] sm:$0xff] }
  0x90   : > { %1461 = vmatprep.subr.bf16.mxu1 %v1460_v25  ;;  %v420_v46 = vld [vmem:[#allocation5 + $0x150] sm:$0xff]  ;;  %v421_v47 = vld [vmem:[#allocation5 + $0x158] sm:$0xff]  ;;  %vm2142_vm2 = vmneg %vm352_vm0  ;;  %v1438_v49 = vpack.c.bf16 %v387_v42, %v386_v41  ;;  %v1440_v52 = vpack.c.bf16 %v405_v45, %v404_v44 }
  0x91   : > { %1431 = vmatpush3.bf16.msra.mxu0 %v1430_v30  ;;  %v2147_v50 = vld [vmem:[%s2127_s8] sm:$0xff]  ;;  %vm2150_vm3 = vmneg %vm365_vm1  ;;  %v388_v53 = vld [vmem:[#allocation5 + $0x50] sm:$0xff]  ;;  %v1472_v57 = vpack.c.bf16 %v421_v47, %v420_v46 }
  0x92   : > { %1433 = vmatprep.subr.bf16.mxu0 %v1432_v31  ;;  %v389_v54 = vld [vmem:[#allocation5 + $0x58] sm:$0xff]  ;;  %v353_v55 = vrot.slane %v2147_v50, 7  ;;  %v366_v56 = vrot.slane %v2147_v50, 6  ;;  %v406_v58 = vld [vmem:[#allocation5 + $0xe0] sm:$0xff]  ;;  %v407_v59 = vld [vmem:[#allocation5 + $0xe8] sm:$0xff] }
  0x93   : > { %1463 = vmatpush3.bf16.msra.mxu1 %v1460_v25  ;;  %v422_v60 = vld [vmem:[#allocation5 + $0x160] sm:$0xff]  ;;  %v423_v61 = vld [vmem:[#allocation5 + $0x168] sm:$0xff]  ;;  %v1442_v62 = vpack.c.bf16 %v389_v54, %v388_v53  ;;  %v1444_v63 = vpack.c.bf16 %v407_v59, %v406_v58  ;;  %v408_v3 = vld [vmem:[#allocation5 + $0xf0] sm:$0xff] }
  0x94   : > { %1465 = vmatprep.subr.bf16.mxu1 %v1464_v34  ;;  %1130 = vmatprep.mubr.msk.f32.mxu0 %vm2142_vm2, %v353_v55  ;;  %v390_v0 = vld [vmem:[#allocation5 + $0x60] sm:$0xff]  ;;  %v391_v1 = vld [vmem:[#allocation5 + $0x68] sm:$0xff]  ;;  %v1476_v2 = vpack.c.bf16 %v423_v61, %v422_v60  ;;  %v409_v4 = vld [vmem:[#allocation5 + $0xf8] sm:$0xff] }
  0x95   : > { %1435 = vmatpush3.bf16.msra.mxu0 %v1434_v39  ;;  %1338 = vmatprep.mubr.msk.f32.mxu1 %vm2150_vm3, %v366_v56  ;;  %v424_v5 = vld [vmem:[#allocation5 + $0x170] sm:$0xff]  ;;  %v425_v6 = vld [vmem:[#allocation5 + $0x178] sm:$0xff]  ;;  %v1446_v7 = vpack.c.bf16 %v391_v1, %v390_v0  ;;  %v1448_v8 = vpack.c.bf16 %v409_v4, %v408_v3  ;;  %v2161_v12 = vld [vmem:[%s2127_s8 + $0x8] sm:$0xff] }
  0x96   : > { %1437 = vmatprep.subr.bf16.mxu0 %v1436_v40  ;;  %v392_v9 = vld [vmem:[#allocation5 + $0x70] sm:$0xff]  ;;  %v393_v10 = vld [vmem:[#allocation5 + $0x78] sm:$0xff]  ;;  %v1480_v11 = vpack.c.bf16 %v425_v6, %v424_v5  ;;  %v655_v13 = vld [vmem:[#allocation7 + $0x80] sm:$0xff]  ;;  %v367_v18 = vrot.slane %v2161_v12, 6  ;;  %v354_v19 = vrot.slane %v2161_v12, 7 }
  0x97   : > { %1467 = vmatpush3.bf16.msra.mxu1 %v1464_v34  ;;  %v656_v14 = vld [vmem:[#allocation7 + $0x88] sm:$0xff]  ;;  %v671_v15 = vld [vmem:[#allocation7 + $0x100] sm:$0xff]  ;;  %v1450_v17 = vpack.c.bf16 %v393_v10, %v392_v9  ;;  %v2166_v21 = vld [vmem:[%s2127_s8 + $0x18] sm:$0xff] }
  0x98   : > { %1469 = vmatprep.subr.bf16.mxu1 %v1468_v43  ;;  %v672_v16 = vld [vmem:[#allocation7 + $0x108] sm:$0xff]  ;;  %v1484_v20 = vpack.c.bf16 %v656_v14, %v655_v13  ;;  %v639_v22 = vld [vmem:[#allocation7] sm:$0xff]  ;;  %v2169_v25 = vld [vmem:[%s2127_s8 + $0x10] sm:$0xff]  ;;  %v368_v31 = vsel %vm365_vm1, %v366_v56, %v367_v18  ;;  %v355_v32 = vsel %vm352_vm0, %v353_v55, %v354_v19  ;;  %v370_v33 = vrot.slane %v2166_v21, 6  ;;  %s1873_s8 = smov [#allocation10]  }
  0x99   : > { %1439 = vmatpush3.bf16.msra.mxu0 %v1438_v49  ;;  %v640_v23 = vld [vmem:[#allocation7 + $0x8] sm:$0xff]  ;;  %v1516_v24 = vpack.c.bf16 %v672_v16, %v671_v15  ;;  %v657_v26 = vld [vmem:[#allocation7 + $0x90] sm:$0xff]  ;;  %v658_v27 = vld [vmem:[#allocation7 + $0x98] sm:$0xff]  ;;  %v369_v28 = vrot.slane %v2169_v25, 6  ;;  %v356_v41 = vrot.slane %v2169_v25, 7  ;;  %v357_v44 = vrot.slane %v2166_v21, 7 }
  0x9a   : > { %1441 = vmatprep.subr.bf16.mxu0 %v1440_v52  ;;  %v673_v29 = vld [vmem:[#allocation7 + $0x110] sm:$0xff]  ;;  %v674_v30 = vld [vmem:[#allocation7 + $0x118] sm:$0xff]  ;;  %v1486_v34 = vpack.c.bf16 %v640_v23, %v639_v22  ;;  %v1488_v35 = vpack.c.bf16 %v658_v27, %v657_v26  ;;  %v659_v38 = vld [vmem:[#allocation7 + $0xa0] sm:$0xff]  ;;  %s1795_s30 = sshll.u32 %s1873_s8, 4  ;;  %s1796_s30 = int_to_ptr.vmem [resolvable:$false] %s1795_s30 }
  0x9b   : > { %1471 = vmatpush3.bf16.msra.mxu1 %v1468_v43  ;;  %v641_v36 = vld [vmem:[#allocation7 + $0x10] sm:$0xff]  ;;  %v642_v37 = vld [vmem:[#allocation7 + $0x18] sm:$0xff]  ;;  %v660_v39 = vld [vmem:[#allocation7 + $0xa8] sm:$0xff]  ;;  %v1520_v40 = vpack.c.bf16 %v674_v30, %v673_v29  ;;  %v371_v45 = vsel %vm365_vm1, %v369_v28, %v370_v33  ;;  %v358_v58 = vsel %vm352_vm0, %v356_v41, %v357_v44  ;;  %s1797_s9 = scalar_lea.vmem %s1796_s30, 1024  ;;  %p1798_p12 = scmp.lt.s32.totalorder %s2215_s20, %s1796_s30 }
  0x9c   : > { %1473 = vmatprep.subr.bf16.mxu1 %v1472_v57  ;;  %v675_v42 = vld [vmem:[#allocation7 + $0x120] sm:$0xff]  ;;  %v676_v43 = vld [vmem:[#allocation7 + $0x128] sm:$0xff]  ;;  %v1490_v46 = vpack.c.bf16 %v642_v37, %v641_v36  ;;  %v1492_v47 = vpack.c.bf16 %v660_v39, %v659_v38  ;;  %v661_v53 = vld [vmem:[#allocation7 + $0xb0] sm:$0xff]  ;;  %p1799_p1 = scmp.lt.s32.totalorder %s1797_s9, %s1791_s28 }
  0x9d   : > { %1443 = vmatpush3.bf16.msra.mxu0 %v1442_v62  ;;  %v643_v49 = vld [vmem:[#allocation7 + $0x20] sm:$0xff]  ;;  %v644_v52 = vld [vmem:[#allocation7 + $0x28] sm:$0xff]  ;;  %v662_v54 = vld [vmem:[#allocation7 + $0xb8] sm:$0xff]  ;;  %v1524_v55 = vpack.c.bf16 %v676_v43, %v675_v42 }
  0x9e   : > { %1445 = vmatprep.subr.bf16.mxu0 %v1444_v63  ;;  %v677_v56 = vld [vmem:[#allocation7 + $0x130] sm:$0xff]  ;;  %v1494_v59 = vpack.c.bf16 %v644_v52, %v643_v49  ;;  %v1496_v60 = vpack.c.bf16 %v662_v54, %v661_v53  ;;  %v646_v62 = vld [vmem:[#allocation7 + $0x38] sm:$0xff]  ;;  %v663_v63 = vld [vmem:[#allocation7 + $0xc0] sm:$0xff]  ;;  %p1800_p2 = por %p1799_p1, %p1798_p12 }
  0x9f   : > { %1475 = vmatpush3.bf16.msra.mxu1 %v1472_v57  ;;  %v678_v57 = vld [vmem:[#allocation7 + $0x138] sm:$0xff]  ;;  %v645_v61 = vld [vmem:[#allocation7 + $0x30] sm:$0xff]  ;;  %v664_v0 = vld [vmem:[#allocation7 + $0xc8] sm:$0xff] }
  0xa0   : > { %1477 = vmatprep.subr.bf16.mxu1 %v1476_v2  ;;  %v1528_v1 = vpack.c.bf16 %v678_v57, %v677_v56  ;;  %v1500_v3 = vpack.c.bf16 %v664_v0, %v663_v63  ;;  %v647_v4 = vld [vmem:[#allocation7 + $0x40] sm:$0xff]  ;;  %v648_v5 = vld [vmem:[#allocation7 + $0x48] sm:$0xff]  ;;  %v649_v13 = vld [vmem:[#allocation7 + $0x50] sm:$0xff]  ;;  %p1801_p4 = pnand %p1800_p2, %p1794_p7 }
  0xa1   : > { %1447 = vmatpush3.bf16.msra.mxu0 %v1446_v7  ;;  %v1502_v6 = vpack.c.bf16 %v648_v5, %v647_v4  ;;  %v665_v7 = vld [vmem:[#allocation7 + $0xd0] sm:$0xff]  ;;  %v679_v9 = vld [vmem:[#allocation7 + $0x140] sm:$0xff]  ;;  %v650_v14 = vld [vmem:[#allocation7 + $0x58] sm:$0xff] }
  0xa2   : > { %1449 = vmatprep.subr.bf16.mxu0 %v1448_v8  ;;  %v666_v8 = vld [vmem:[#allocation7 + $0xd8] sm:$0xff]  ;;  %v1506_v16 = vpack.c.bf16 %v650_v14, %v649_v13  ;;  %v668_v18 = vld [vmem:[#allocation7 + $0xe8] sm:$0xff]  ;;  %v681_v19 = vld [vmem:[#allocation7 + $0x150] sm:$0xff] }
  0xa3   : > { %1479 = vmatpush3.bf16.msra.mxu1 %v1476_v2  ;;  %v1498_v2 = vpack.c.bf16 %v646_v62, %v645_v61  ;;  %v1504_v10 = vpack.c.bf16 %v666_v8, %v665_v7  ;;  %v682_v22 = vld [vmem:[#allocation7 + $0x158] sm:$0xff]  ;;  %v651_v23 = vld [vmem:[#allocation7 + $0x60] sm:$0xff]  ;;  %v653_v33 = vld [vmem:[#allocation7 + $0x70] sm:$0xff] }
  0xa4   : > { %1481 = vmatprep.subr.bf16.mxu1 %v1480_v11  ;;  %v1536_v26 = vpack.c.bf16 %v682_v22, %v681_v19  ;;  %v670_v29 = vld [vmem:[#allocation7 + $0xf8] sm:$0xff]  ;;  %v683_v30 = vld [vmem:[#allocation7 + $0x160] sm:$0xff]  ;;  %v685_v37 = vld [vmem:[#allocation7 + $0x170] sm:$0xff] }
  0xa5   : > { %1451 = vmatpush3.bf16.msra.mxu0 %v1450_v17  ;;  %v667_v17 = vld [vmem:[#allocation7 + $0xe0] sm:$0xff]  ;;  %v686_v38 = vld [vmem:[#allocation7 + $0x178] sm:$0xff]  ;;  %v874_v62 = vld [vmem:[#allocation8 + $0x10] sm:$0xff] }
  0xa6   : > { %1485 = vmatprep.subr.bf16.mxu0 %v1484_v20  ;;  %v1508_v20 = vpack.c.bf16 %v668_v18, %v667_v17  ;;  %v872_v39 = vld [vmem:[#allocation8] sm:$0xff]  ;;  %v875_v63 = vld [vmem:[#allocation8 + $0x18] sm:$0xff] }
  0xa7   : > { %1483 = vmatpush3.bf16.msra.mxu1 %v1480_v11  ;;  %v680_v11 = vld [vmem:[#allocation7 + $0x148] sm:$0xff]  ;;  %v1137_v49 = vld [vmem:[%s2266_s2] ss:$0 sm:$0xff]  ;;  %v1552_v5 = vpack.c.bf16 %v875_v63, %v874_v62 }
  0xa8   : > { %1517 = vmatprep.subr.bf16.mxu1 %v1516_v24  ;;  %491 = vmatmul.mubr.f32.vlgmr.msra.gmra.mrb[0].mxu0 %v2147_v50  ;;  %v1532_v15 = vpack.c.bf16 %v680_v11, %v679_v9  ;;  %v876_v9 = vld [vmem:[#allocation8 + $0x20] sm:$0xff] }
  0xa9   : > { %495 = vmatprep.mubr.f32.mxu0 %v355_v32  ;;  %1487 = vmatpush3.bf16.msra.mxu0 %v1486_v34  ;;  %v684_v32 = vld [vmem:[#allocation7 + $0x168] sm:$0xff]  ;;  %v654_v34 = vld [vmem:[#allocation7 + $0x78] sm:$0xff] }
  0xaa   : > { %1339 = vmatmul.mubr.f32.vlgmr.msra.gmra.mrb[0].mxu1 %v368_v31  ;;  %1489 = vmatprep.subr.bf16.mxu0 %v1488_v35  ;;  %v1540_v35 = vpack.c.bf16 %v684_v32, %v683_v30  ;;  %v1514_v36 = vpack.c.bf16 %v654_v34, %v653_v33  ;;  %v881_v32 = vld [vmem:[#allocation8 + $0x48] sm:$0xff] }
  0xab   : > { %1341 = vmatprep.mubr.msk.f32.mxu1 %vm2150_vm3, %v369_v28  ;;  %1519 = vmatpush3.bf16.msra.mxu1 %v1516_v24  ;;  %v652_v24 = vld [vmem:[#allocation7 + $0x68] sm:$0xff]  ;;  %v669_v28 = vld [vmem:[#allocation7 + $0xf0] sm:$0xff] }
  0xac   : > { %496 = vmatmul.mubr.f32.gmra.mrb[2].mxu0 %v2161_v12  ;;  %1521 = vmatprep.subr.bf16.mxu1 %v1520_v40  ;;  %v1510_v27 = vpack.c.bf16 %v652_v24, %v651_v23  ;;  %v1512_v31 = vpack.c.bf16 %v670_v29, %v669_v28  ;;  %v878_v23 = vld [vmem:[#allocation8 + $0x30] sm:$0xff]  ;;  %v879_v24 = vld [vmem:[#allocation8 + $0x38] sm:$0xff] }
  0xad   : > { %1132 = vmatprep.mubr.msk.f32.mxu0 %vm2142_vm2, %v356_v41  ;;  %1491 = vmatpush3.bf16.msra.mxu0 %v1490_v46  ;;  %v873_v41 = vld [vmem:[#allocation8 + $0x8] sm:$0xff]  ;;  %v1560_v29 = vpack.c.bf16 %v879_v24, %v878_v23 }
  0xae   : > { %1342 = vmatmul.mubr.f32.gmra.mrb[2].mxu1 %v371_v45  ;;  %1493 = vmatprep.subr.bf16.mxu0 %v1492_v47  ;;  %v1548_v42 = vpack.c.bf16 %v873_v41, %v872_v39  ;;  %v884_v39 = vld [vmem:[#allocation8 + $0x60] sm:$0xff] }
  0xaf   : > { %1523 = vmatpush3.bf16.msra.mxu1 %v1520_v40  ;;  %v1544_v40 = vpack.c.bf16 %v686_v38, %v685_v37  ;;  %v882_v37 = vld [vmem:[#allocation8 + $0x50] sm:$0xff]  ;;  %v883_v38 = vld [vmem:[#allocation8 + $0x58] sm:$0xff] }
  0xb0   : > { %501 = vmatmul.mubr.f32.gmra.mrb[4].mxu0 %v2169_v25  ;;  %1525 = vmatprep.subr.bf16.mxu1 %v1524_v55  ;;  %v1568_v51 = vpack.c.bf16 %v883_v38, %v882_v37 }
  0xb1   : > { %505 = vmatprep.mubr.f32.mxu0 %v358_v58  ;;  %1495 = vmatpush3.bf16.msra.mxu0 %v1494_v59 }
  0xb2   : > { %1497 = vmatprep.subr.bf16.mxu0 %v1496_v60 }
  0xb3   : > { %1527 = vmatpush3.bf16.msra.mxu1 %v1524_v55 }
  0xb4   : > { %506 = vmatmul.mubr.f32.gmra.mrb[6].mxu0 %v2166_v21  ;;  %1529 = vmatprep.subr.bf16.mxu1 %v1528_v1 }
  0xb5   : > { %1499 = vmatpush3.bf16.msra.mxu0 %v1498_v2 }
  0xb6   : > { %1501 = vmatprep.subr.bf16.mxu0 %v1500_v3 }
  0xb7   : > { %1531 = vmatpush3.bf16.msra.mxu1 %v1528_v1 }
  0xb8   : > { %1533 = vmatprep.subr.bf16.mxu1 %v1532_v15 }
  0xb9   : > { %1503 = vmatpush3.bf16.msra.mxu0 %v1502_v6 }
  0xba   : > { %1505 = vmatprep.subr.bf16.mxu0 %v1504_v10  ;;  %v877_v10 = vld [vmem:[#allocation8 + $0x28] sm:$0xff] }
  0xbb   : > { %1535 = vmatpush3.bf16.msra.mxu1 %v1532_v15  ;;  %v1556_v17 = vpack.c.bf16 %v877_v10, %v876_v9 }
  0xbc   : > { %1537 = vmatprep.subr.bf16.mxu1 %v1536_v26 }
  0xbd   : > { %1507 = vmatpush3.bf16.msra.mxu0 %v1506_v16 }
  0xbe   : > { %1509 = vmatprep.subr.bf16.mxu0 %v1508_v20 }
  0xbf   : > { %1539 = vmatpush3.bf16.msra.mxu1 %v1536_v26 }
  0xc0   : > { %1541 = vmatprep.subr.bf16.mxu1 %v1540_v35 }
  0xc1   : > { %1511 = vmatpush3.bf16.msra.mxu0 %v1510_v27 }
  0xc2   : > { %1513 = vmatprep.subr.bf16.mxu0 %v1512_v31  ;;  %v880_v31 = vld [vmem:[#allocation8 + $0x40] sm:$0xff] }
  0xc3   : > { %1543 = vmatpush3.bf16.msra.mxu1 %v1540_v35  ;;  %v1564_v35 = vpack.c.bf16 %v881_v32, %v880_v31 }
  0xc4   : > { %1545 = vmatprep.subr.bf16.mxu1 %v1544_v40 }
  0xc5   : > { %1515 = vmatpush3.bf16.msra.mxu0 %v1514_v36 }
  0xc6   : > { %1549 = vmatprep.subr.bf16.mxu0 %v1548_v42 }
  0xc7   : > { %1547 = vmatpush3.bf16.msra.mxu1 %v1544_v40  ;;  %v885_v40 = vld [vmem:[#allocation8 + $0x68] sm:$0xff] }
  0xc8   : > { %1580 = vmatprep.subr.bf16.mxu1 %v1548_v42  ;;  %v1572_v41 = vpack.c.bf16 %v885_v40, %v884_v39 }
 0x17b   : > { %v1190_v43 = vpop.f32.mrb[0].mxu0 }
 0x17c   : > { %v1191_v44 = vpop.f32.mrb[1].mxu0 }
 0x17d   : > { %v1340_v45 = vpop.f32.mrb[0].mxu1  ;;  %v1192_v46 = vadd.f32 %v1191_v44, %v1190_v43  ;;  %v887_v43 = vld [vmem:[#allocation8 + $0x78] sm:$0xff] }
 0x17e   : > { %v577_v47 = vpop.f32.mrb[1].mxu1 }
 0x17f   : > { %v578_v52 = vadd.f32 %v1192_v46, %v577_v47  ;;  %v1193_v53 = vpop.f32.mrb[2].mxu0 }
 0x180   : > { %v1194_v54 = vpop.f32.mrb[3].mxu0 }
 0x181   : > { %v1343_v55 = vpop.f32.mrb[2].mxu1  ;;  %v603_v56 = vadd.f32 %v1137_v49, %v578_v52  ;;  %v1195_v57 = vadd.f32 %v1194_v54, %v1193_v53 }
 0x182   : > { %v587_v58 = vpop.f32.mrb[3].mxu1 }
 0x183   : > { %v607_v59 = vmax.f32 %v603_v56, 0.0  ;;  %v583_v60 = vadd.f32 %v1340_v45, %v1195_v57  ;;  %v1196_v61 = vpop.f32.mrb[4].mxu0 }
 0x184   : > { %v1197_v0 = vpop.f32.mrb[5].mxu0 }
 0x185   : > { %v604_v1 = vadd.f32 %v1137_v49, %v583_v60  ;;  %v615_v2 = vrot.slane %v607_v59, 7  ;;  %v627_v3 = vrot.slane %v607_v59, 6  ;;  %v1198_v4 = vadd.f32 %v1197_v0, %v1196_v61  ;;  %v1146_v0 = vld [vmem:[%s2268_s4] ss:$0 sm:$0xff] }
 0x187   : > { %v608_v6 = vmax.f32 %v604_v1, 0.0  ;;  %1139 = vmatprep.mubr.msk.f32.mxu0 %vm2142_vm2, %v615_v2  ;;  %1376 = vmatprep.mubr.msk.f32.mxu1 %vm2150_vm3, %v627_v3  ;;  %v1199_v7 = vpop.f32.mrb[6].mxu0  ;;  %v588_v8 = vadd.f32 %v1198_v4, %v587_v58 }
 0x188   : > { %752 = vmatmul.mubr.f32.vlgmr.msra.gmra.mrb[8].mxu0 %v607_v59  ;;  %v1200_v11 = vpop.f32.mrb[7].mxu0 }
 0x189   : > { %v628_v13 = vrot.slane %v608_v6, 6  ;;  %1551 = vmatpush3.bf16.msra.mxu0 %v1548_v42  ;;  %v616_v14 = vrot.slane %v608_v6, 7  ;;  %v605_v15 = vadd.f32 %v1137_v49, %v588_v8  ;;  %v1201_v16 = vadd.f32 %v1200_v11, %v1199_v7 }
 0x18a   : > { %1553 = vmatprep.subr.bf16.mxu0 %v1552_v5 }
 0x18b   : > { %v617_v18 = vsel %vm352_vm0, %v615_v2, %v616_v14  ;;  %v629_v19 = vsel %vm365_vm1, %v627_v3, %v628_v13  ;;  %v609_v20 = vmax.f32 %v605_v15, 0.0  ;;  %v593_v22 = vadd.f32 %v1343_v55, %v1201_v16  ;;  %v1147_v3 = vld [vmem:[%s2270_s6] ss:$0 sm:$0xff] }
 0x18c   : > { %756 = vmatprep.mubr.f32.mxu0 %v617_v18  ;;  %1377 = vmatmul.mubr.f32.vlgmr.msra.gmra.mrb[4].mxu1 %v629_v19 }
 0x18d   : > { %1588 = vmatpush3.bf16.msra.mxu1 %v1548_v42  ;;  %1555 = vmatpush3.bf16.msra.mxu0 %v1552_v5  ;;  %v606_v26 = vadd.f32 %v1137_v49, %v593_v22  ;;  %v618_v27 = vrot.slane %v609_v20, 7  ;;  %v630_v28 = vrot.slane %v609_v20, 6  ;;  %v886_v42 = vld [vmem:[#allocation8 + $0x70] sm:$0xff] }
 0x18e   : > { %757 = vmatmul.mubr.f32.gmra.mrb[10].mxu0 %v608_v6  ;;  %1581 = vmatprep.subr.bf16.mxu1 %v1552_v5  ;;  %v1576_v44 = vpack.c.bf16 %v887_v43, %v886_v42 }
 0x18f   : > { %v610_v30 = vmax.f32 %v606_v26, 0.0  ;;  %1557 = vmatprep.subr.bf16.mxu0 %v1556_v17  ;;  %1141 = vmatprep.mubr.msk.f32.mxu0 %vm2142_vm2, %v618_v27 }
 0x190   : > { %1379 = vmatprep.mubr.msk.f32.mxu1 %vm2150_vm3, %v630_v28 }
 0x191   : > { %1589 = vmatpush3.bf16.msra.mxu1 %v1552_v5  ;;  %1559 = vmatpush3.bf16.msra.mxu0 %v1556_v17  ;;  %v619_v33 = vrot.slane %v610_v30, 7  ;;  %v631_v34 = vrot.slane %v610_v30, 6 }
 0x192   : > { %1582 = vmatprep.subr.bf16.mxu1 %v1556_v17  ;;  %1561 = vmatprep.subr.bf16.mxu0 %v1560_v29 }
 0x193   : > { %762 = vmatmul.mubr.f32.gmra.mrb[12].mxu0 %v609_v20  ;;  %v620_v36 = vsel %vm352_vm0, %v618_v27, %v619_v33  ;;  %v632_v48 = vsel %vm365_vm1, %v630_v28, %v631_v34 }
 0x194   : > { %766 = vmatprep.mubr.f32.mxu0 %v620_v36  ;;  %1380 = vmatmul.mubr.f32.gmra.mrb[6].mxu1 %v632_v48 }
 0x195   : > { %1590 = vmatpush3.bf16.msra.mxu1 %v1556_v17  ;;  %1563 = vmatpush3.bf16.msra.mxu0 %v1560_v29 }
 0x196   : > { %1583 = vmatprep.subr.bf16.mxu1 %v1560_v29  ;;  %1565 = vmatprep.subr.bf16.mxu0 %v1564_v35 }
 0x197   : > { %767 = vmatmul.mubr.f32.gmra.mrb[14].mxu0 %v610_v30  ;;  %1417 = vmatprep.mubr.f32.mxu1 %v2169_v25 }
 0x198   : > { %1414 = vmatprep.mubr.f32.mxu0 %v2147_v50 }
 0x199   : > { %1591 = vmatpush3.bf16.msra.mxu1 %v1560_v29  ;;  %1567 = vmatpush3.bf16.msra.mxu0 %v1564_v35 }
 0x19a   : > { %1584 = vmatprep.subr.bf16.mxu1 %v1564_v35  ;;  %1569 = vmatprep.subr.bf16.mxu0 %v1568_v51 }
 0x19d   : > { %1592 = vmatpush3.bf16.msra.mxu1 %v1564_v35  ;;  %1571 = vmatpush3.bf16.msra.mxu0 %v1568_v51 }
 0x19e   : > { %1585 = vmatprep.subr.bf16.mxu1 %v1568_v51  ;;  %1573 = vmatprep.subr.bf16.mxu0 %v1572_v41 }
 0x1a1   : > { %1593 = vmatpush3.bf16.msra.mxu1 %v1568_v51  ;;  %1575 = vmatpush3.bf16.msra.mxu0 %v1572_v41 }
 0x1a2   : > { %1586 = vmatprep.subr.bf16.mxu1 %v1572_v41  ;;  %1577 = vmatprep.subr.bf16.mxu0 %v1576_v44 }
 0x1a5   : > { %1594 = vmatpush3.bf16.msra.mxu1 %v1572_v41  ;;  %1579 = vmatpush3.bf16.msra.mxu0 %v1576_v44 }
 0x1a6   : > { %1587 = vmatprep.subr.bf16.mxu1 %v1576_v44 }
 0x1a8   : > { %1415 = vmatmul.mubr.f32.vlgmr.msra.gmra.mrb[16].mxu0 %v2161_v12 }
 0x1a9   : > { %1595 = vmatpush3.bf16.msra.mxu1 %v1576_v44 }
 0x1ac   : > { %1418 = vmatmul.mubr.f32.vlgmr.msra.gmra.mrb[8].mxu1 %v2166_v21 }
 0x25b   : > { %v1254_v50 = vpop.f32.mrb[8].mxu0 }
 0x25c   : > { %v1255_v25 = vpop.f32.mrb[9].mxu0 }
 0x25d   : > { %v1256_v45 = vadd.f32 %v1255_v25, %v1254_v50 }
 0x25f   : > { %v1378_v46 = vpop.f32.mrb[4].mxu1 }
 0x260   : > { %v838_v47 = vpop.f32.mrb[5].mxu1 }
 0x261   : > { %v1257_v49 = vpop.f32.mrb[10].mxu0  ;;  %v839_v52 = vadd.f32 %v1256_v45, %v838_v47 }
 0x262   : > { %v1258_v53 = vpop.f32.mrb[11].mxu0 }
 0x263   : > { %v1259_v54 = vadd.f32 %v1258_v53, %v1257_v49  ;;  %v864_v2 = vadd.f32 %v1146_v0, %v839_v52 }
 0x265   : > { %v844_v55 = vadd.f32 %v1378_v46, %v1259_v54  ;;  %v868_v9 = vmax.f32 %v864_v2, 0.0 }
 0x266   : > { %v1260_v56 = vpop.f32.mrb[12].mxu0 }
 0x267   : > { %v1261_v57 = vpop.f32.mrb[13].mxu0  ;;  %v1381_v58 = vpop.f32.mrb[6].mxu1  ;;  %v865_v1 = vadd.f32 %v1146_v0, %v844_v55 }
 0x268   : > { %v1262_v59 = vadd.f32 %v1261_v57, %v1260_v56  ;;  %v848_v60 = vpop.f32.mrb[7].mxu1 }
 0x269   : > { %v869_v6 = vmax.f32 %v865_v1, 0.0 }
 0x26a   : > { %v1263_v61 = vpop.f32.mrb[14].mxu0  ;;  %v849_v12 = vadd.f32 %v1262_v59, %v848_v60 }
 0x26b   : > { %v1264_v62 = vpop.f32.mrb[15].mxu0 }
 0x26c   : > { %v1265_v63 = vadd.f32 %v1264_v62, %v1263_v61  ;;  %v866_v10 = vadd.f32 %v1146_v0, %v849_v12 }
 0x26e   : > { %v854_v21 = vadd.f32 %v1381_v58, %v1265_v63  ;;  %v870_v20 = vmax.f32 %v866_v10, 0.0 }
 0x270   : > { %v867_v5 = vadd.f32 %v1146_v0, %v854_v21 }
 0x272   : > { %v871_v16 = vmax.f32 %v867_v5, 0.0 }
 0x27b   : > { %v1416_v4 = vpop.f32.mrb[16].mxu0 }
 0x27c   : > { %v981_v7 = vadd.f32 %v1416_v4, %v1147_v3  ;;  %v954_v8 = vpop.f32.mrb[17].mxu0 }
 0x27d   : > { %v980_v11 = vadd.f32 %v1147_v3, %v954_v8 }
 0x27e   : > { %v985_v13 = vadd.f32 %v981_v7, %v869_v6 }
 0x27f   : > { %v984_v14 = vadd.f32 %v980_v11, %v868_v9  ;;  %v1419_v15 = vpop.f32.mrb[8].mxu1 }
 0x280   : > { %v989_v17 = vmax.f32 %v985_v13, 0.0  ;;  %v983_v18 = vadd.f32 %v1419_v15, %v1147_v3  ;;  %v964_v19 = vpop.f32.mrb[9].mxu1 }
 0x281   : > { %v988_v22 = vmax.f32 %v984_v14, 0.0  ;;  %v982_v23 = vadd.f32 %v1147_v3, %v964_v19 }
 0x282   : > { %993 = vst [vmem:[%s341_s12 + $0x8] sm:$0xff] %v989_v17  ;;  %v987_v24 = vadd.f32 %v983_v18, %v871_v16 }
 0x283   : > { %992 = vst [vmem:[%s341_s12] sm:$0xff] %v988_v22  ;;  %v986_v26 = vadd.f32 %v982_v23, %v870_v20 }
 0x284   : > { %v991_v27 = vmax.f32 %v987_v24, 0.0 }
 0x285   : > { %v990_v28 = vmax.f32 %v986_v26, 0.0 }
 0x286   : > { %995 = vst [vmem:[%s341_s12 + $0x18] sm:$0xff] %v991_v27 }
 0x287   : > { %994 = vst [vmem:[%s341_s12 + $0x10] sm:$0xff] %v990_v28 }
 0x288   : > { %1804 = shalt.err (!%p1801_p4)
}
 0x289   : > { %s1805_s13 = scalar_lea.hbm %s2220_s23, 512  ;;  %s1809_s14 = scalar_lea.hbm %s2271_s7, 1024 }
 0x28a   : > { %p1806_p9 = scmp.ne.s32.totalorder %s2220_s23, %s1805_s13  ;;  %p1810_p8 = scmp.lt.u32.totalorder %s2220_s23, %s2271_s7 }
 0x28b   : > { %p1811_p13 = scmp.lt.u32.totalorder %s1809_s14, %s1805_s13  ;;  %p1813_p10 = scmp.lt.u32.totalorder %s1805_s13, %s2220_s23 }
 0x28c   : > { %p1807_p0 = pnand %p1806_p9, %p2070_p5 }
 0x28d   : > { %p1812_p6 = por %p1811_p13, %p1810_p8 }
 0x28e   : > { %p1808_p11 = pneg %p1807_p0 }
 0x28f   : > { %p1814_p3 = por %p1813_p10, %p1812_p6 }
 0x291   : > { %p1815_p7 = pnand %p1814_p3, %p1808_p11 }
 0x293   : > { %1818 = shalt.err (!%p1815_p7)
}
 0x294   : > { %s1874_s16 = smov 128   ;;  %s1875_s29 = smov 8  }
 0x295   : > { %1610 = dma.vmem_to_hbm [thread:$0]  (%p2070_p5), %s2215_s20, 512, %s2220_s23, %s997_s11, %s1874_s16, %s1874_s16, %s1875_s29  }
 0x296 PF: > { %s2295_s28 = sld [smem:[#allocation15_spill]]  ;;  %s1026_s8 = sand.u32 1, %s1853_s24  }
 0x297   : > { %p2297_p1 = scmp.ge.s32.totalorder %s1865_s27, 2  ;;  %s1027_s30 = scalar_lea.sflag [#allocation4], %s1026_s8 }
 0x29c   : > { %p2296_p12 = scmp.ne.s32.totalorder %s2295_s28, 0 }
 0x29e   : > { %p1627_p2 = pnand %p2297_p1, %p2296_p12 }
 0x2a0   : > { %1848 = dma.done.wait (!%p1627_p2), %s1027_s30, 512  }
 0x2a1   : > { %1850 = vsyncadd (!%p1627_p2), %s1027_s30, 4294966784  ;;  %p22_p4 = scmp.ge.s32.totalorder %s2056_s22, 4   ;;  %s2298_s24 = smov %s1857_s25 }
 0x2a2   : > { %s2299_s25 = smov %s1861_s26  ;;  %s2300_s26 = smov %s2066_s18 }
 0x2a3   : > { %s2301_s27 = smov %s2056_s22  ;;  %24 = sbr.rel (!%p22_p4) target bundleno = 7 (0x7), region = 105 }
 0x2aa   :  { %1032 = vsyncpa [#allocation3], 1 }
 0x2ab   :  { %1034 = vsyncpa [#allocation3 + $0x1], 1 }
 0x2ac   :  { %1035 = vsyncpa [#allocation6], 1 }
 0x2ad   :  { %1036 = vsyncpa [#allocation9], 1 }
 0x2ae   :  { %1037 = vsyncpa [#allocation4], 1 }
 0x2af   :  { %1039 = vsyncpa [#allocation4 + $0x1], 1 }

</bundles_post_ra>
